<compile_context>
chip_gen: v7x
topology: tpu7x:2x2x1
jax: 0.10.0
libtpu: 0.0.40
codegen_flags: <defaults>
</compile_context>

<pallas_src>
import math
import jax
import jax.numpy as jnp
from jax.experimental import pallas as pl
from jax.experimental.pallas import tpu as pltpu

HIDDEN = 128          # fixed by the PyTorch module
LANE = 128            # TPU lane width


def _round_up(x, m):
    return ((x + m - 1) // m) * m


def qnet_kernel(x_ref, w1_ref, b1_ref, w2_ref, b2_ref, w3_ref, b3_ref, o_ref):
    # All operands of this tile are VMEM-resident; three MXU matmuls fused.
    x = x_ref[...]                                                    # bf16 (TM, D_in)
    h1 = jnp.dot(x, w1_ref[...], preferred_element_type=jnp.float32)  # f32  (TM, 128)
    h1 = jnp.maximum(h1 + b1_ref[...], 0.0).astype(jnp.bfloat16)
    h2 = jnp.dot(h1, w2_ref[...], preferred_element_type=jnp.float32)
    h2 = jnp.maximum(h2 + b2_ref[...], 0.0).astype(jnp.bfloat16)
    out = jnp.dot(h2, w3_ref[...], preferred_element_type=jnp.float32) + b3_ref[...]
    o_ref[...] = out.astype(o_ref.dtype)                              # lane-dense (TM, 128) store


def qnetwork_forward(x, params, *, tm=512):
    """x: [B, input_dim] float32. params: dict of w1,b1,w2,b2,w3,b3 (f32,
    weights stored [in_features, out_features])."""
    B, input_dim = x.shape
    out_dim = params["w3"].shape[1]
    out_pad = _round_up(out_dim, LANE)          # lane-dense output slab

    # --- batch tiling --------------------------------------------------------
    b_pad = _round_up(B, 8)
    tile_m = min(tm, b_pad)
    b_pad = _round_up(b_pad, tile_m)
    n_tiles = b_pad // tile_m

    # --- operand prep (bf16 MXU inputs, zero-padded rows / output columns) ---
    x_bf = jnp.zeros((b_pad, input_dim), jnp.bfloat16).at[:B].set(
        x.astype(jnp.bfloat16))
    w1 = params["w1"].astype(jnp.bfloat16)
    w2 = params["w2"].astype(jnp.bfloat16)
    w3 = jnp.zeros((HIDDEN, out_pad), jnp.bfloat16).at[:, :out_dim].set(
        params["w3"].astype(jnp.bfloat16))
    b1 = params["b1"]                                      # f32 (1, 128)
    b2 = params["b2"]                                      # f32 (1, 128)
    b3 = jnp.zeros((1, out_pad), jnp.float32).at[:, :out_dim].set(params["b3"])

    # --- BlockSpecs ----------------------------------------------------------
    x_spec = pl.BlockSpec((tile_m, input_dim), lambda i: (i, 0))
    o_spec = pl.BlockSpec((tile_m, out_pad), lambda i: (i, 0))
    resident = lambda a: pl.BlockSpec(a.shape, lambda i: (0, 0))  # weights stay put

    out = pl.pallas_call(
        qnet_kernel,
        out_shape=jax.ShapeDtypeStruct((b_pad, out_pad), jnp.float32),
        grid=(n_tiles,),
        in_specs=[
            x_spec,
            resident(w1), resident(b1),
            resident(w2), resident(b2),
            resident(w3), resident(b3),
        ],
        out_specs=o_spec,
        compiler_params=pltpu.CompilerParams(
            dimension_semantics=("parallel",)),
    )(x_bf, w1, b1, w2, b2, w3, b3)

    return out[:B, :out_dim]


def init_params(key, input_dim, output_dim, hidden=HIDDEN):
    """Mimics nn.Linear default init: U(-1/sqrt(fan_in), 1/sqrt(fan_in))."""
    ks = jax.random.split(key, 6)

    def linear(kw, kb, fan_in, fan_out):
        bound = 1.0 / math.sqrt(fan_in)
        w = jax.random.uniform(kw, (fan_in, fan_out), jnp.float32, -bound, bound)
        b = jax.random.uniform(kb, (1, fan_out), jnp.float32, -bound, bound)
        return w, b

    w1, b1 = linear(ks[0], ks[1], input_dim, hidden)
    w2, b2 = linear(ks[2], ks[3], hidden, hidden)
    w3, b3 = linear(ks[4], ks[5], hidden, output_dim)
    return dict(w1=w1, b1=b1, w2=w2, b2=b2, w3=w3, b3=b3)


def qnetwork_ref(x, p):
    """Reference matching the kernel's bf16-operand / f32-accumulate numerics."""
    xb = x.astype(jnp.bfloat16)
    w1 = p["w1"].astype(jnp.bfloat16)
    w2 = p["w2"].astype(jnp.bfloat16)
    w3 = p["w3"].astype(jnp.bfloat16)
    h1 = jnp.maximum(
        jnp.dot(xb, w1, preferred_element_type=jnp.float32) + p["b1"], 0.0
    ).astype(jnp.bfloat16)
    h2 = jnp.maximum(
        jnp.dot(h1, w2, preferred_element_type=jnp.float32) + p["b2"], 0.0
    ).astype(jnp.bfloat16)
    return jnp.dot(h2, w3, preferred_element_type=jnp.float32) + p["b3"]


if __name__ == "__main__":
    key = jax.random.PRNGKey(0)
    k_x, k_p = jax.random.split(key)

    batch, input_dim, output_dim = 64, 16, 4
    x = jax.random.normal(k_x, (batch, input_dim), dtype=jnp.float32)
    params = init_params(k_p, input_dim, output_dim)

    out = qnetwork_forward(x, params)
    out = jax.block_until_ready(out)

    ref = qnetwork_ref(x, params)
    assert out.shape == (batch, output_dim)
    assert jnp.allclose(out, ref, atol=1e-3, rtol=1e-3), "mismatch vs reference"

    print("KERNEL_OK")
</pallas_src>

<mosaic_0001>
module attributes {stable_mosaic.version = 11 : i64} {
  func.func @qnet_kernel(%arg0: i32, %arg1: memref<64x16xbf16, #tpu.memory_space<vmem>>, %arg2: memref<16x128xbf16, #tpu.memory_space<vmem>>, %arg3: memref<1x128xf32, #tpu.memory_space<vmem>>, %arg4: memref<128x128xbf16, #tpu.memory_space<vmem>>, %arg5: memref<1x128xf32, #tpu.memory_space<vmem>>, %arg6: memref<128x128xbf16, #tpu.memory_space<vmem>>, %arg7: memref<1x128xf32, #tpu.memory_space<vmem>>, %arg8: memref<64x128xf32, #tpu.memory_space<vmem>>) attributes {dimension_semantics = [#tpu.dimension_semantics<parallel>], iteration_bounds = array<i64: 1>, scalar_prefetch = 0 : i64, scratch_operands = 0 : i64, tpu.core_type = #tpu.core_type<tc>, window_params = [{transform_indices = @transform_0, window_bounds = array<i64: 64, 16>}, {pipeline_mode = #tpu.pipeline_mode<synchronous>, transform_indices = @transform_1, window_bounds = array<i64: 16, 128>}, {pipeline_mode = #tpu.pipeline_mode<synchronous>, transform_indices = @transform_2, window_bounds = array<i64: 1, 128>}, {pipeline_mode = #tpu.pipeline_mode<synchronous>, transform_indices = @transform_3, window_bounds = array<i64: 128, 128>}, {pipeline_mode = #tpu.pipeline_mode<synchronous>, transform_indices = @transform_4, window_bounds = array<i64: 1, 128>}, {pipeline_mode = #tpu.pipeline_mode<synchronous>, transform_indices = @transform_5, window_bounds = array<i64: 128, 128>}, {pipeline_mode = #tpu.pipeline_mode<synchronous>, transform_indices = @transform_6, window_bounds = array<i64: 1, 128>}, {transform_indices = @transform_7, window_bounds = array<i64: 64, 128>}]} {
    %c0 = arith.constant 0 : index
    %c0_0 = arith.constant 0 : index
    %0 = vector.load %arg1[%c0, %c0_0] : memref<64x16xbf16, #tpu.memory_space<vmem>>, vector<64x16xbf16>
    %c0_1 = arith.constant 0 : index
    %c0_2 = arith.constant 0 : index
    %1 = vector.load %arg2[%c0_1, %c0_2] : memref<16x128xbf16, #tpu.memory_space<vmem>>, vector<16x128xbf16>
    %cst = arith.constant dense<0.000000e+00> : vector<64x128xf32>
    %2 = tpu.matmul %0, %1, %cst {dimension_numbers = #tpu.dot_dimension_numbers<[1], [0], [0], [1], [0, 0, 1, 1], [], []>} : vector<64x16xbf16>, vector<16x128xbf16>, vector<64x128xf32> -> vector<64x128xf32>
    %c0_3 = arith.constant 0 : index
    %c0_4 = arith.constant 0 : index
    %3 = vector.load %arg3[%c0_3, %c0_4] : memref<1x128xf32, #tpu.memory_space<vmem>>, vector<1x128xf32>
    %4 = vector.broadcast %3 : vector<1x128xf32> to vector<64x128xf32>
    %5 = arith.addf %2, %4 : vector<64x128xf32>
    %cst_5 = arith.constant 0.000000e+00 : f32
    %6 = vector.broadcast %cst_5 : f32 to vector<64x128xf32>
    %7 = arith.maximumf %5, %6 : vector<64x128xf32>
    %8 = arith.truncf %7 : vector<64x128xf32> to vector<64x128xbf16>
    %c0_6 = arith.constant 0 : index
    %c0_7 = arith.constant 0 : index
    %9 = vector.load %arg4[%c0_6, %c0_7] : memref<128x128xbf16, #tpu.memory_space<vmem>>, vector<128x128xbf16>
    %cst_8 = arith.constant dense<0.000000e+00> : vector<64x128xf32>
    %10 = tpu.matmul %8, %9, %cst_8 {dimension_numbers = #tpu.dot_dimension_numbers<[1], [0], [0], [1], [0, 0, 1, 1], [], []>} : vector<64x128xbf16>, vector<128x128xbf16>, vector<64x128xf32> -> vector<64x128xf32>
    %c0_9 = arith.constant 0 : index
    %c0_10 = arith.constant 0 : index
    %11 = vector.load %arg5[%c0_9, %c0_10] : memref<1x128xf32, #tpu.memory_space<vmem>>, vector<1x128xf32>
    %12 = vector.broadcast %11 : vector<1x128xf32> to vector<64x128xf32>
    %13 = arith.addf %10, %12 : vector<64x128xf32>
    %cst_11 = arith.constant 0.000000e+00 : f32
    %14 = vector.broadcast %cst_11 : f32 to vector<64x128xf32>
    %15 = arith.maximumf %13, %14 : vector<64x128xf32>
    %16 = arith.truncf %15 : vector<64x128xf32> to vector<64x128xbf16>
    %c0_12 = arith.constant 0 : index
    %c0_13 = arith.constant 0 : index
    %17 = vector.load %arg6[%c0_12, %c0_13] : memref<128x128xbf16, #tpu.memory_space<vmem>>, vector<128x128xbf16>
    %cst_14 = arith.constant dense<0.000000e+00> : vector<64x128xf32>
    %18 = tpu.matmul %16, %17, %cst_14 {dimension_numbers = #tpu.dot_dimension_numbers<[1], [0], [0], [1], [0, 0, 1, 1], [], []>} : vector<64x128xbf16>, vector<128x128xbf16>, vector<64x128xf32> -> vector<64x128xf32>
    %c0_15 = arith.constant 0 : index
    %c0_16 = arith.constant 0 : index
    %19 = vector.load %arg7[%c0_15, %c0_16] : memref<1x128xf32, #tpu.memory_space<vmem>>, vector<1x128xf32>
    %20 = vector.broadcast %19 : vector<1x128xf32> to vector<64x128xf32>
    %21 = arith.addf %18, %20 : vector<64x128xf32>
    %c0_17 = arith.constant 0 : index
    %c0_18 = arith.constant 0 : index
    %22 = vector.load %arg8[%c0_17, %c0_18] : memref<64x128xf32, #tpu.memory_space<vmem>>, vector<64x128xf32>
    tpu.vector_store %arg8[%c0_17, %c0_18], %21 {strides = array<i32>} : memref<64x128xf32, #tpu.memory_space<vmem>>, vector<64x128xf32>,
    return
  }
  func.func @transform_0(%arg0: i32) -> (i32, i32) {
    %c0_i32 = arith.constant 0 : i32
    %c0_i32_0 = arith.constant 0 : i32
    return %arg0, %c0_i32 : i32, i32
  }
  func.func @transform_1(%arg0: i32) -> (i32, i32) {
    %c0_i32 = arith.constant 0 : i32
    %c0_i32_0 = arith.constant 0 : i32
    %c0_i32_1 = arith.constant 0 : i32
    return %c0_i32, %c0_i32_0 : i32, i32
  }
  func.func @transform_2(%arg0: i32) -> (i32, i32) {
    %c0_i32 = arith.constant 0 : i32
    %c0_i32_0 = arith.constant 0 : i32
    %c0_i32_1 = arith.constant 0 : i32
    return %c0_i32, %c0_i32_0 : i32, i32
  }
  func.func @transform_3(%arg0: i32) -> (i32, i32) {
    %c0_i32 = arith.constant 0 : i32
    %c0_i32_0 = arith.constant 0 : i32
    %c0_i32_1 = arith.constant 0 : i32
    return %c0_i32, %c0_i32_0 : i32, i32
  }
  func.func @transform_4(%arg0: i32) -> (i32, i32) {
    %c0_i32 = arith.constant 0 : i32
    %c0_i32_0 = arith.constant 0 : i32
    %c0_i32_1 = arith.constant 0 : i32
    return %c0_i32, %c0_i32_0 : i32, i32
  }
  func.func @transform_5(%arg0: i32) -> (i32, i32) {
    %c0_i32 = arith.constant 0 : i32
    %c0_i32_0 = arith.constant 0 : i32
    %c0_i32_1 = arith.constant 0 : i32
    return %c0_i32, %c0_i32_0 : i32, i32
  }
  func.func @transform_6(%arg0: i32) -> (i32, i32) {
    %c0_i32 = arith.constant 0 : i32
    %c0_i32_0 = arith.constant 0 : i32
    %c0_i32_1 = arith.constant 0 : i32
    return %c0_i32, %c0_i32_0 : i32, i32
  }
  func.func @transform_7(%arg0: i32) -> (i32, i32) {
    %c0_i32 = arith.constant 0 : i32
    %c0_i32_0 = arith.constant 0 : i32
    return %arg0, %c0_i32 : i32, i32
  }
}

</mosaic_0001>

<bundles_post_ra>
// kernel: tpu_custom_call.1
= control target key start
LH: loop header
LB: loop body
LE: loop exit
PB: predicated region body
PF: predicated region fallthrough
CT: control target
= control target key end

     0   :  { %12 = vsyncpa [#allocation3], 0  ;;  %s825_s0 = inlined_call_operand.vmem [shape: bf16[64,16], index: 0, kind: input, shape index: {}]   ;;  %s826_s1 = inlined_call_operand.vmem [shape: bf16[16,128], index: 1, kind: input, shape index: {}]   ;;  %s827_s2 = inlined_call_operand.vmem [shape: f32[1,128], index: 2, kind: input, shape index: {}]   ;;  %s828_s3 = inlined_call_operand.hbm [shape: bf16[128,128], index: 3, kind: input, shape index: {}]   ;;  %s829_s4 = inlined_call_operand.vmem [shape: f32[1,128], index: 4, kind: input, shape index: {}]   ;;  %s830_s5 = inlined_call_operand.hbm [shape: bf16[128,128], index: 5, kind: input, shape index: {}]   ;;  %s831_s6 = inlined_call_operand.vmem [shape: f32[1,128], index: 6, kind: input, shape index: {}]   ;;  %s832_s7 = inlined_call_operand.hbm [shape: f32[64,128], index: 7, kind: output, shape index: {}]  }
   0x1   :  { %13 = vsyncpa [#allocation6], 0 }
   0x2   :  { %14 = vsyncpa [#allocation4], 0  ;;  %s714_s24 = smov [#allocation2]   ;;  %s642_s28 = scalar_lea.hbm %s828_s3, 1024 }
   0x3   :  { %s26_s25 = sshll.u32 %s714_s24, 4  ;;  %p643_p0 = scmp.ne.s32.totalorder %s828_s3, %s642_s28  ;;  %s27_s25 = int_to_ptr.vmem [resolvable:$true] %s26_s25 }
   0x4   :  { %p646_p1 = scmp.lt.u32.totalorder %s642_s28, %s828_s3 }
   0x6   :  { %p648_p2 = pnand %p646_p1, %p643_p0 }
   0x8   :  { %651 = shalt.err (!%p648_p2)
}
   0x9   :  { %s652_s10 = scalar_lea.vmem %s27_s25, 1024  ;;  %p657_p4 = scmp.lt.s32.totalorder %s27_s25, %s27_s25 }
   0xa   :  { %p653_p3 = scmp.ne.s32.totalorder %s27_s25, %s652_s10  ;;  %p658_p5 = scmp.lt.s32.totalorder %s652_s10, %s652_s10 }
   0xc   :  { %p659_p6 = por %p658_p5, %p657_p4 }
   0xe   :  { %p660_p7 = pnand %p659_p6, %p653_p3 }
  0x10   :  { %663 = shalt.err (!%p660_p7)
}
  0x11   :  { %s715_s11 = smov 64   ;;  %s716_s12 = smov 4  }
  0x12   :  { %32 = dma.hbm_to_vmem [thread:$0]  %s828_s3, 1024, %s27_s25, [#allocation3], %s715_s11, %s715_s11, %s716_s12  }
  0x13   :  { %s717_s15 = smov [#allocation5]   ;;  %s664_s19 = scalar_lea.hbm %s830_s5, 1024 }
  0x14   :  { %s40_s16 = sshll.u32 %s717_s15, 4  ;;  %p665_p8 = scmp.ne.s32.totalorder %s830_s5, %s664_s19  ;;  %s41_s16 = int_to_ptr.vmem [resolvable:$true] %s40_s16 }
  0x15   :  { %p668_p9 = scmp.lt.u32.totalorder %s664_s19, %s830_s5 }
  0x17   :  { %p670_p10 = pnand %p668_p9, %p665_p8 }
  0x19   :  { %673 = shalt.err (!%p670_p10)
}
  0x1a   :  { %s674_s24 = scalar_lea.vmem %s41_s16, 1024  ;;  %p679_p12 = scmp.lt.s32.totalorder %s41_s16, %s41_s16 }
  0x1b   :  { %p675_p11 = scmp.ne.s32.totalorder %s41_s16, %s674_s24  ;;  %p680_p13 = scmp.lt.s32.totalorder %s674_s24, %s674_s24 }
  0x1d   :  { %p681_p0 = por %p680_p13, %p679_p12 }
  0x1f   :  { %p682_p1 = pnand %p681_p0, %p675_p11 }
  0x21   :  { %685 = shalt.err (!%p682_p1)
}
  0x22   :  { %46 = dma.hbm_to_vmem [thread:$0]  %s830_s5, 1024, %s41_s16, [#allocation6], %s715_s11, %s715_s11, %s716_s12  }
  0x23   :  { %708 = dma.done.wait [#allocation3], 1024  }
  0x24   :  { %709 = vsyncadd [#allocation3], 4294966272 }
  0x25   :  { %710 = dma.done.wait [#allocation6], 1024  }
  0x26   :  { %711 = vsyncadd [#allocation6], 4294966272  ;;  %v621_v0 = vld [vmem:[%s826_s1] sm:$0xff]   ;;  %vm99_vm0 = vcmask 130048   ;;  %v623_v2 = vld [vmem:[%s825_s0 + $0x8] sm:$0xff]   ;;  %s718_s14 = smov [#allocation7]  }
  0x27   :  { %v622_v1 = vld [vmem:[%s825_s0] sm:$0xff]   ;;  %556 = vmatprep.subr.bf16.mxu0 %v621_v0  ;;  %v624_v3 = vld [vmem:[%s825_s0 + $0x10] sm:$0xff]   ;;  %v627_v5 = vld [vmem:[#allocation2 + $0x8] sm:$0xff]   ;;  %s486_s15 = sshll.u32 %s718_s14, 4  ;;  %s487_s15 = int_to_ptr.vmem [resolvable:$true] %s486_s15 }
  0x28   :  { %557 = vmatpush3.bf16.msra.mxu0 %v621_v0  ;;  %558 = vmatprep.mubr.msk.bf16.mxu0 %vm99_vm0, %v622_v1  ;;  %v626_v4 = vld [vmem:[#allocation2] sm:$0xff]   ;;  %v628_v6 = vld [vmem:[#allocation2 + $0x10] sm:$0xff]   ;;  %v625_v7 = vld [vmem:[%s825_s0 + $0x18] sm:$0xff]   ;;  %p691_p3 = scmp.lt.s32.totalorder %s487_s15, %s487_s15 }
  0x29   :  { %566 = vmatprep.subr.bf16.mxu1 %v626_v4  ;;  %v629_v8 = vld [vmem:[#allocation2 + $0x18] sm:$0xff]   ;;  %v630_v9 = vld [vmem:[#allocation2 + $0x20] sm:$0xff]   ;;  %v631_v10 = vld [vmem:[#allocation2 + $0x28] sm:$0xff]  }
  0x2a   :  { %567 = vmatpush3.bf16.msra.mxu1 %v626_v4  ;;  %v632_v11 = vld [vmem:[#allocation2 + $0x30] sm:$0xff]   ;;  %v633_v12 = vld [vmem:[#allocation2 + $0x38] sm:$0xff]   ;;  %v634_v13 = vld [vmem:[#allocation5] sm:$0xff]  }
  0x2b   :  { %559 = vmatmul.mubr.msk.bf16.vlgmr.msra.gmra.mrb[0].mxu0 %vm99_vm0, %v623_v2  ;;  %568 = vmatprep.subr.bf16.mxu1 %v627_v5  ;;  %v635_v14 = vld [vmem:[#allocation5 + $0x8] sm:$0xff]   ;;  %v636_v15 = vld [vmem:[#allocation5 + $0x10] sm:$0xff]   ;;  %v637_v16 = vld [vmem:[#allocation5 + $0x18] sm:$0xff]  }
  0x2c   :  { %562 = vmatprep.mubr.msk.bf16.mxu0 %vm99_vm0, %v624_v3  ;;  %590 = vmatprep.subr.bf16.mxu0 %v634_v13  ;;  %v638_v17 = vld [vmem:[#allocation5 + $0x20] sm:$0xff]   ;;  %v639_v18 = vld [vmem:[#allocation5 + $0x28] sm:$0xff]   ;;  %v640_v48 = vld [vmem:[#allocation5 + $0x30] sm:$0xff]  }
  0x2d   :  { %591 = vmatpush3.bf16.msra.mxu0 %v634_v13  ;;  %v499_v19 = vld [vmem:[%s827_s2] ss:$0 sm:$0xff]  ;;  %v641_v49 = vld [vmem:[#allocation5 + $0x38] sm:$0xff]  }
  0x2e   :  { %569 = vmatpush3.bf16.msra.mxu1 %v627_v5  ;;  %592 = vmatprep.subr.bf16.mxu0 %v635_v14  ;;  %v509_v50 = vld [vmem:[%s829_s4] ss:$0 sm:$0xff] }
  0x2f   :  { %570 = vmatprep.subr.bf16.mxu1 %v628_v6 }
  0x31   :  { %593 = vmatpush3.bf16.msra.mxu0 %v635_v14 }
  0x32   :  { %571 = vmatpush3.bf16.msra.mxu1 %v628_v6  ;;  %594 = vmatprep.subr.bf16.mxu0 %v636_v15 }
  0x33   :  { %563 = vmatmul.mubr.msk.bf16.gmra.mrb[4].mxu0 %vm99_vm0, %v625_v7  ;;  %572 = vmatprep.subr.bf16.mxu1 %v629_v8 }
  0x35   :  { %595 = vmatpush3.bf16.msra.mxu0 %v636_v15  ;;  %v518_v15 = vld [vmem:[%s831_s6] ss:$0 sm:$0xff]  ;;  %s686_s6 = scalar_lea.vmem %s487_s15, 1024 }
  0x36   :  { %573 = vmatpush3.bf16.msra.mxu1 %v629_v8  ;;  %596 = vmatprep.subr.bf16.mxu0 %v637_v16  ;;  %p687_p2 = scmp.ne.s32.totalorder %s487_s15, %s686_s6  ;;  %p692_p4 = scmp.lt.s32.totalorder %s686_s6, %s686_s6 }
  0x37   :  { %574 = vmatprep.subr.bf16.mxu1 %v630_v9 }
  0x38   :  { %p693_p5 = por %p692_p4, %p691_p3 }
  0x39   :  { %597 = vmatpush3.bf16.msra.mxu0 %v637_v16 }
  0x3a   :  { %575 = vmatpush3.bf16.msra.mxu1 %v630_v9  ;;  %598 = vmatprep.subr.bf16.mxu0 %v638_v17  ;;  %p694_p6 = pnand %p693_p5, %p687_p2 }
  0x3b   :  { %576 = vmatprep.subr.bf16.mxu1 %v631_v10 }
  0x3d   :  { %599 = vmatpush3.bf16.msra.mxu0 %v638_v17 }
  0x3e   :  { %577 = vmatpush3.bf16.msra.mxu1 %v631_v10  ;;  %600 = vmatprep.subr.bf16.mxu0 %v639_v18 }
  0x3f   :  { %578 = vmatprep.subr.bf16.mxu1 %v632_v11 }
  0x41   :  { %601 = vmatpush3.bf16.msra.mxu0 %v639_v18 }
  0x42   :  { %579 = vmatpush3.bf16.msra.mxu1 %v632_v11  ;;  %602 = vmatprep.subr.bf16.mxu0 %v640_v48 }
  0x43   :  { %580 = vmatprep.subr.bf16.mxu1 %v633_v12 }
  0x45   :  { %603 = vmatpush3.bf16.msra.mxu0 %v640_v48 }
  0x46   :  { %581 = vmatpush3.bf16.msra.mxu1 %v633_v12  ;;  %604 = vmatprep.subr.bf16.mxu0 %v641_v49 }
  0x49   :  { %605 = vmatpush3.bf16.msra.mxu0 %v641_v49 }
  0xfe   :  { %v560_v20 = vpop.f32.mrb[0].mxu0 }
  0xff   :  { %v155_v21 = vadd.f32 %v560_v20, %v499_v19  ;;  %v146_v22 = vpop.f32.mrb[1].mxu0 }
 0x100   :  { %v147_v23 = vadd.f32 %v499_v19, %v146_v22  ;;  %v561_v24 = vpop.f32.mrb[2].mxu0 }
 0x101   :  { %v158_v25 = vadd.f32 %v561_v24, %v499_v19  ;;  %v149_v26 = vpop.f32.mrb[3].mxu0  ;;  %v179_v28 = vmax.f32 %v155_v21, 0.0 }
 0x102   :  { %v150_v27 = vadd.f32 %v499_v19, %v149_v26  ;;  %v177_v30 = vmax.f32 %v147_v23, 0.0 }
 0x103   :  { %v180_v29 = vmax.f32 %v158_v25, 0.0 }
 0x104   :  { %v178_v31 = vmax.f32 %v150_v27, 0.0 }
 0x105   :  { %v186_v32 = vpack.c.bf16 %v180_v29, %v179_v28 }
 0x106   :  { %v564_v33 = vpop.f32.mrb[4].mxu0  ;;  %v185_v34 = vpack.c.bf16 %v178_v31, %v177_v30 }
 0x107   :  { %v171_v35 = vadd.f32 %v564_v33, %v499_v19  ;;  %v162_v36 = vpop.f32.mrb[5].mxu0 }
 0x108   :  { %v163_v37 = vadd.f32 %v499_v19, %v162_v36  ;;  %v565_v38 = vpop.f32.mrb[6].mxu0  ;;  %582 = vmatprep.mubr.bf16.mxu1 %v185_v34 }
 0x109   :  { %v174_v39 = vadd.f32 %v565_v38, %v499_v19  ;;  %v165_v40 = vpop.f32.mrb[7].mxu0  ;;  %583 = vmatmul.mubr.bf16.vlgmr.msra.gmra.mrb[0].mxu1 %v186_v32  ;;  %v183_v42 = vmax.f32 %v171_v35, 0.0 }
 0x10a   :  { %v166_v41 = vadd.f32 %v499_v19, %v165_v40  ;;  %v181_v44 = vmax.f32 %v163_v37, 0.0 }
 0x10b   :  { %v184_v43 = vmax.f32 %v174_v39, 0.0 }
 0x10c   :  { %v182_v45 = vmax.f32 %v166_v41, 0.0 }
 0x10d   :  { %v188_v46 = vpack.c.bf16 %v184_v43, %v183_v42 }
 0x10e   :  { %v187_v47 = vpack.c.bf16 %v182_v45, %v181_v44 }
 0x110   :  { %586 = vmatprep.mubr.bf16.mxu1 %v187_v47 }
 0x111   :  { %587 = vmatmul.mubr.bf16.gmra.mrb[4].mxu1 %v188_v46 }
 0x1dc   :  { %v584_v51 = vpop.f32.mrb[0].mxu1 }
 0x1dd   :  { %v303_v52 = vadd.f32 %v584_v51, %v509_v50  ;;  %v294_v53 = vpop.f32.mrb[1].mxu1 }
 0x1de   :  { %v295_v54 = vadd.f32 %v509_v50, %v294_v53  ;;  %v585_v55 = vpop.f32.mrb[2].mxu1 }
 0x1df   :  { %v306_v56 = vadd.f32 %v585_v55, %v509_v50  ;;  %v297_v57 = vpop.f32.mrb[3].mxu1  ;;  %v327_v59 = vmax.f32 %v303_v52, 0.0 }
 0x1e0   :  { %v298_v58 = vadd.f32 %v509_v50, %v297_v57  ;;  %v325_v61 = vmax.f32 %v295_v54, 0.0 }
 0x1e1   :  { %v328_v60 = vmax.f32 %v306_v56, 0.0 }
 0x1e2   :  { %v326_v62 = vmax.f32 %v298_v58, 0.0 }
 0x1e3   :  { %v334_v63 = vpack.c.bf16 %v328_v60, %v327_v59 }
 0x1e4   :  { %v333_v0 = vpack.c.bf16 %v326_v62, %v325_v61  ;;  %v588_v1 = vpop.f32.mrb[4].mxu1 }
 0x1e5   :  { %v319_v2 = vadd.f32 %v588_v1, %v509_v50  ;;  %v310_v3 = vpop.f32.mrb[5].mxu1 }
 0x1e6   :  { %v311_v4 = vadd.f32 %v509_v50, %v310_v3  ;;  %v589_v5 = vpop.f32.mrb[6].mxu1  ;;  %606 = vmatprep.mubr.bf16.mxu0 %v333_v0 }
 0x1e7   :  { %v322_v6 = vadd.f32 %v589_v5, %v509_v50  ;;  %v313_v7 = vpop.f32.mrb[7].mxu1  ;;  %607 = vmatmul.mubr.bf16.vlgmr.msra.gmra.mrb[8].mxu0 %v334_v63  ;;  %v331_v9 = vmax.f32 %v319_v2, 0.0 }
 0x1e8   :  { %v314_v8 = vadd.f32 %v509_v50, %v313_v7  ;;  %v329_v11 = vmax.f32 %v311_v4, 0.0 }
 0x1e9   :  { %v332_v10 = vmax.f32 %v322_v6, 0.0 }
 0x1ea   :  { %v330_v12 = vmax.f32 %v314_v8, 0.0 }
 0x1eb   :  { %v336_v13 = vpack.c.bf16 %v332_v10, %v331_v9 }
 0x1ec   :  { %v335_v14 = vpack.c.bf16 %v330_v12, %v329_v11 }
 0x1ee   :  { %610 = vmatprep.mubr.bf16.mxu0 %v335_v14 }
 0x1ef   :  { %611 = vmatmul.mubr.bf16.gmra.mrb[12].mxu0 %v336_v13 }
 0x2ba   :  { %v608_v16 = vpop.f32.mrb[8].mxu0 }
 0x2bb   :  { %v451_v17 = vadd.f32 %v608_v16, %v518_v15  ;;  %v442_v18 = vpop.f32.mrb[9].mxu0 }
 0x2bc   :  { %v443_v19 = vadd.f32 %v518_v15, %v442_v18  ;;  %v609_v20 = vpop.f32.mrb[10].mxu0 }
 0x2bd   :  { %475 = vst [vmem:[#allocation7 + $0x10] sm:$0xff] %v451_v17  ;;  %v454_v21 = vadd.f32 %v609_v20, %v518_v15  ;;  %v445_v22 = vpop.f32.mrb[11].mxu0 }
 0x2be   :  { %473 = vst [vmem:[#allocation7] sm:$0xff] %v443_v19  ;;  %v446_v23 = vadd.f32 %v518_v15, %v445_v22 }
 0x2bf   :  { %476 = vst [vmem:[#allocation7 + $0x18] sm:$0xff] %v454_v21 }
 0x2c0   :  { %474 = vst [vmem:[#allocation7 + $0x8] sm:$0xff] %v446_v23 }
 0x2c2   :  { %v612_v24 = vpop.f32.mrb[12].mxu0 }
 0x2c3   :  { %v467_v25 = vadd.f32 %v612_v24, %v518_v15  ;;  %v458_v26 = vpop.f32.mrb[13].mxu0 }
 0x2c4   :  { %v459_v27 = vadd.f32 %v518_v15, %v458_v26  ;;  %v613_v28 = vpop.f32.mrb[14].mxu0 }
 0x2c5   :  { %479 = vst [vmem:[#allocation7 + $0x30] sm:$0xff] %v467_v25  ;;  %v470_v29 = vadd.f32 %v613_v28, %v518_v15  ;;  %v461_v30 = vpop.f32.mrb[15].mxu0 }
 0x2c6   :  { %477 = vst [vmem:[#allocation7 + $0x20] sm:$0xff] %v459_v27  ;;  %v462_v31 = vadd.f32 %v518_v15, %v461_v30 }
 0x2c7   :  { %480 = vst [vmem:[#allocation7 + $0x38] sm:$0xff] %v470_v29 }
 0x2c8   :  { %478 = vst [vmem:[#allocation7 + $0x28] sm:$0xff] %v462_v31 }
 0x2c9   :  { %697 = shalt.err (!%p694_p6)
}
 0x2ca   :  { %s698_s18 = scalar_lea.hbm %s832_s7, 1024 }
 0x2cb   :  { %p699_p7 = scmp.ne.s32.totalorder %s832_s7, %s698_s18  ;;  %p702_p8 = scmp.lt.u32.totalorder %s698_s18, %s832_s7 }
 0x2cd   :  { %p704_p9 = pnand %p702_p8, %p699_p7 }
 0x2cf   :  { %707 = shalt.err (!%p704_p9)
}
 0x2d0   :  { %s719_s23 = smov 128   ;;  %s720_s24 = smov 8  }
 0x2d1   :  { %492 = dma.vmem_to_hbm [thread:$0]  %s487_s15, 1024, %s832_s7, [#allocation4], %s719_s23, %s719_s23, %s720_s24  }
 0x2d2   :  { %712 = dma.done.wait [#allocation4], 1024  }
 0x2d3   :  { %713 = vsyncadd [#allocation4], 4294966272 }
 0x2d4   :  { %496 = vsyncpa [#allocation3], 1 }
 0x2d5   :  { %497 = vsyncpa [#allocation6], 1 }
 0x2d6   :  { %498 = vsyncpa [#allocation4], 1 }

</bundles_post_ra>
